<compile_context>
chip_gen: v6e
topology: v6e:2x2x1
jax: 0.10.0
libtpu: 0.0.40
codegen_flags: <defaults>
</compile_context>

<pallas_src>
import functools

import jax
import jax.numpy as jnp
from jax.experimental import pallas as pl
from jax.experimental.pallas import tpu as pltpu

_NEG = -1e30  # bias for padded softmax lanes -> exp underflows to exactly 0


def _round_up(x, m):
    return ((x + m - 1) // m) * m


def _actor_kernel(x_ref, w1_ref, w2_ref, w3_ref, b_ref, o_ref):
    """Fused MLP + softmax for one batch tile. Weights/biases are VMEM-resident."""
    fc1 = w1_ref.shape[1]
    fc2 = w2_ref.shape[1]
    lanes = w3_ref.shape[1]

    # bf16 x bf16 -> f32 accumulate on the MXU.
    x = x_ref[...].astype(jnp.bfloat16)

    h1 = jnp.dot(x, w1_ref[...], preferred_element_type=jnp.float32) + b_ref[0:1, :fc1]
    h1 = jnp.maximum(h1, 0.0).astype(jnp.bfloat16)

    h2 = jnp.dot(h1, w2_ref[...], preferred_element_type=jnp.float32) + b_ref[1:2, :fc2]
    h2 = jnp.maximum(h2, 0.0).astype(jnp.bfloat16)

    # 128-lane logits (padded lanes carry bias=-1e30 -> prob exactly 0).
    logits = jnp.dot(h2, w3_ref[...], preferred_element_type=jnp.float32) + b_ref[2:3, :lanes]

    # Numerically-stable softmax in f32 over the lane-dense last axis.
    m = jnp.max(logits, axis=-1, keepdims=True)
    e = jnp.exp(logits - m)
    denom = jnp.sum(e, axis=-1, keepdims=True)
    probs = e / denom  # exact divide: kernel is DMA/step bound, not EUP bound

    o_ref[...] = probs.astype(o_ref.dtype)  # bf16 store -> half the writeback


def prepare_params(params):
    """Cast weights to bf16, pad the head to 128 lanes, pack biases into one array."""
    w1, b1, w2, b2, w3, b3 = params
    fc1 = w1.shape[1]
    fc2 = w2.shape[1]
    n_actions = w3.shape[1]
    lanes = max(128, _round_up(n_actions, 128))

    w3p = jnp.pad(w3, ((0, 0), (0, lanes - n_actions)))

    # One (3, D) f32 bias pack (fewer pipelined operands on the small-batch path).
    bias_dim = max(fc1, fc2, lanes)
    b1p = jnp.pad(b1.reshape(1, -1), ((0, 0), (0, bias_dim - fc1)))
    b2p = jnp.pad(b2.reshape(1, -1), ((0, 0), (0, bias_dim - fc2)))
    b3p = jnp.pad(b3.reshape(1, -1), ((0, 0), (0, bias_dim - n_actions)),
                  constant_values=_NEG)
    biases = jnp.concatenate([b1p, b2p, b3p], axis=0).astype(jnp.float32)

    return (
        w1.astype(jnp.bfloat16),
        w2.astype(jnp.bfloat16),
        w3p.astype(jnp.bfloat16),
        biases,
    )


@functools.partial(jax.jit, static_argnames=("n_actions", "block_batch"))
def actor_forward(state, prepared_params, *, n_actions, block_batch=1024):
    """Returns Categorical probabilities (bf16), shape (batch, n_actions)."""
    w1, w2, w3, biases = prepared_params
    batch, input_dims = state.shape
    lanes = w3.shape[1]

    # --- batch tile selection ---------------------------------------------
    tb_cap = min(block_batch, 2048)  # 2048 keeps v7x's 64 MiB VMEM comfortable
    if batch <= tb_cap and batch <= 256:
        # Latency-bound small-batch RL path: one block == full array (always legal).
        tb = batch
    else:
        # >= 2 tiles so both v7x TensorCores get work; tiles are multiples of 16
        # (bf16-output-safe sublane tiling).  No wrapper-side padding: Pallas
        # clips the ragged last block.
        nsteps = max(2, pl.cdiv(batch, tb_cap))
        tb = min(2048, _round_up(pl.cdiv(batch, nsteps), 16))
    grid = (pl.cdiv(batch, tb),)

    # VMEM limit scales with the tile (~6 KB/row intermediates + weights/headroom).
    vmem_limit = int(min(32 << 20, max(8 << 20, tb * 6 * 1024 + (2 << 20))))

    # Weight/bias blocks: full array, same block every grid step -> DMA'd once.
    full = lambda a: pl.BlockSpec(a.shape, lambda i: (0,) * a.ndim)

    out = pl.pallas_call(
        _actor_kernel,
        out_shape=jax.ShapeDtypeStruct((batch, lanes), jnp.bfloat16),
        grid=grid,
        in_specs=[
            pl.BlockSpec((tb, input_dims), lambda i: (i, 0)),
            full(w1), full(w2), full(w3), full(biases),
        ],
        out_specs=pl.BlockSpec((tb, lanes), lambda i: (i, 0)),
        compiler_params=pltpu.CompilerParams(
            dimension_semantics=("parallel",),  # batch tiles shard across TCs (v7x)
            vmem_limit_bytes=vmem_limit,
        ),
    )(state, w1, w2, w3, biases)

    # Lane slice back to the real action count (padded lanes carry exactly 0).
    return out[:, :n_actions]


def init_params(key, input_dims, n_actions, fc1_dims=256, fc2_dims=256):
    """Deterministic PyTorch-style Linear init: U(-1/sqrt(fan_in), 1/sqrt(fan_in))."""
    ks = jax.random.split(key, 6)

    def linear(kw, kb, fan_in, fan_out):
        bound = 1.0 / jnp.sqrt(jnp.float32(fan_in))
        w = jax.random.uniform(kw, (fan_in, fan_out), jnp.float32, -bound, bound)
        b = jax.random.uniform(kb, (1, fan_out), jnp.float32, -bound, bound)
        return w, b

    w1, b1 = linear(ks[0], ks[1], input_dims, fc1_dims)
    w2, b2 = linear(ks[2], ks[3], fc1_dims, fc2_dims)
    w3, b3 = linear(ks[4], ks[5], fc2_dims, n_actions)
    return (w1, b1, w2, b2, w3, b3)


def _reference(state, params):
    """Plain-JAX reference with the same bf16-weight / f32-accumulate math."""
    w1, b1, w2, b2, w3, b3 = params
    bf = jnp.bfloat16
    h1 = jnp.maximum(
        jnp.dot(state.astype(bf), w1.astype(bf), preferred_element_type=jnp.float32) + b1, 0.0)
    h2 = jnp.maximum(
        jnp.dot(h1.astype(bf), w2.astype(bf), preferred_element_type=jnp.float32) + b2, 0.0)
    logits = jnp.dot(h2.astype(bf), w3.astype(bf), preferred_element_type=jnp.float32) + b3
    return jax.nn.softmax(logits, axis=-1)


if __name__ == "__main__":
    key = jax.random.PRNGKey(0)
    k_param, k_state, k_state2 = jax.random.split(key, 3)

    input_dims = 8        # env observation size
    n_actions = 4
    fc1_dims = fc2_dims = 256  # module defaults

    params = init_params(k_param, input_dims, n_actions, fc1_dims, fc2_dims)
    prepped = prepare_params(params)

    # ---- small per-step batch (typical RL actor call, grid = 1) ----
    batch = 8
    state = jax.random.normal(k_state, (batch, input_dims), dtype=jnp.float32)
    probs = actor_forward(state, prepped, n_actions=n_actions)
    jax.block_until_ready(probs)

    assert probs.shape == (batch, n_actions)
    p32 = probs.astype(jnp.float32)
    row_sums = jnp.sum(p32, axis=-1)
    assert bool(jnp.all(jnp.abs(row_sums - 1.0) < 2e-2))  # bf16 output quantization
    ref = _reference(state, params)
    assert bool(jnp.allclose(p32, ref, atol=8e-3, rtol=2e-2))

    # ---- larger, non-tile-aligned batch: multi-step grid + ragged last block ----
    batch2 = 200
    state2 = jax.random.normal(k_state2, (batch2, input_dims), dtype=jnp.float32)
    probs2 = actor_forward(state2, prepped, n_actions=n_actions, block_batch=64)
    jax.block_until_ready(probs2)

    assert probs2.shape == (batch2, n_actions)
    p32_2 = probs2.astype(jnp.float32)
    row_sums2 = jnp.sum(p32_2, axis=-1)
    assert bool(jnp.all(jnp.abs(row_sums2 - 1.0) < 2e-2))
    ref2 = _reference(state2, params)
    assert bool(jnp.allclose(p32_2, ref2, atol=8e-3, rtol=2e-2))

    # TODO(synk): torch.distributions.Categorical (sampling / log_prob / entropy) is
    # host-side distribution machinery, not kernel math; we return its probability
    # parameterization (bf16 — consumers needing exact normalization should renorm).
    print("KERNEL_OK")
</pallas_src>

<mosaic_0001>
module attributes {stable_mosaic.version = 11 : i64} {
  func.func @_actor_kernel(%arg0: i32, %arg1: memref<8x8xf32, #tpu.memory_space<vmem>>, %arg2: memref<8x256xbf16, #tpu.memory_space<vmem>>, %arg3: memref<256x256xbf16, #tpu.memory_space<vmem>>, %arg4: memref<256x128xbf16, #tpu.memory_space<vmem>>, %arg5: memref<3x256xf32, #tpu.memory_space<vmem>>, %arg6: memref<8x128xbf16, #tpu.memory_space<vmem>>) attributes {dimension_semantics = [#tpu.dimension_semantics<parallel>], iteration_bounds = array<i64: 1>, scalar_prefetch = 0 : i64, scratch_operands = 0 : i64, tpu.core_type = #tpu.core_type<tc>, window_params = [{transform_indices = @transform_0, window_bounds = array<i64: 8, 8>}, {pipeline_mode = #tpu.pipeline_mode<synchronous>, transform_indices = @transform_1, window_bounds = array<i64: 8, 256>}, {pipeline_mode = #tpu.pipeline_mode<synchronous>, transform_indices = @transform_2, window_bounds = array<i64: 256, 256>}, {pipeline_mode = #tpu.pipeline_mode<synchronous>, transform_indices = @transform_3, window_bounds = array<i64: 256, 128>}, {pipeline_mode = #tpu.pipeline_mode<synchronous>, transform_indices = @transform_4, window_bounds = array<i64: 3, 256>}, {transform_indices = @transform_5, window_bounds = array<i64: 8, 128>}]} {
    %c0 = arith.constant 0 : index
    %c0_0 = arith.constant 0 : index
    %0 = vector.load %arg1[%c0, %c0_0] : memref<8x8xf32, #tpu.memory_space<vmem>>, vector<8x8xf32>
    %1 = arith.truncf %0 : vector<8x8xf32> to vector<8x8xbf16>
    %c0_1 = arith.constant 0 : index
    %c0_2 = arith.constant 0 : index
    %2 = vector.load %arg2[%c0_1, %c0_2] : memref<8x256xbf16, #tpu.memory_space<vmem>>, vector<8x256xbf16>
    %cst = arith.constant dense<0.000000e+00> : vector<8x256xf32>
    %3 = tpu.matmul %1, %2, %cst {dimension_numbers = #tpu.dot_dimension_numbers<[1], [0], [0], [1], [0, 0, 1, 1], [], []>} : vector<8x8xbf16>, vector<8x256xbf16>, vector<8x256xf32> -> vector<8x256xf32>
    %c0_3 = arith.constant 0 : index
    %c0_4 = arith.constant 0 : index
    %4 = vector.load %arg5[%c0_3, %c0_4] : memref<3x256xf32, #tpu.memory_space<vmem>>, vector<1x256xf32>
    %5 = vector.broadcast %4 : vector<1x256xf32> to vector<8x256xf32>
    %6 = arith.addf %3, %5 : vector<8x256xf32>
    %cst_5 = arith.constant 0.000000e+00 : f32
    %7 = vector.broadcast %cst_5 : f32 to vector<8x256xf32>
    %8 = arith.maximumf %6, %7 : vector<8x256xf32>
    %9 = arith.truncf %8 : vector<8x256xf32> to vector<8x256xbf16>
    %c0_6 = arith.constant 0 : index
    %c0_7 = arith.constant 0 : index
    %10 = vector.load %arg3[%c0_6, %c0_7] : memref<256x256xbf16, #tpu.memory_space<vmem>>, vector<256x256xbf16>
    %cst_8 = arith.constant dense<0.000000e+00> : vector<8x256xf32>
    %11 = tpu.matmul %9, %10, %cst_8 {dimension_numbers = #tpu.dot_dimension_numbers<[1], [0], [0], [1], [0, 0, 1, 1], [], []>} : vector<8x256xbf16>, vector<256x256xbf16>, vector<8x256xf32> -> vector<8x256xf32>
    %c1 = arith.constant 1 : index
    %c0_9 = arith.constant 0 : index
    %12 = vector.load %arg5[%c1, %c0_9] : memref<3x256xf32, #tpu.memory_space<vmem>>, vector<1x256xf32>
    %13 = vector.broadcast %12 : vector<1x256xf32> to vector<8x256xf32>
    %14 = arith.addf %11, %13 : vector<8x256xf32>
    %cst_10 = arith.constant 0.000000e+00 : f32
    %15 = vector.broadcast %cst_10 : f32 to vector<8x256xf32>
    %16 = arith.maximumf %14, %15 : vector<8x256xf32>
    %17 = arith.truncf %16 : vector<8x256xf32> to vector<8x256xbf16>
    %c0_11 = arith.constant 0 : index
    %c0_12 = arith.constant 0 : index
    %18 = vector.load %arg4[%c0_11, %c0_12] : memref<256x128xbf16, #tpu.memory_space<vmem>>, vector<256x128xbf16>
    %cst_13 = arith.constant dense<0.000000e+00> : vector<8x128xf32>
    %19 = tpu.matmul %17, %18, %cst_13 {dimension_numbers = #tpu.dot_dimension_numbers<[1], [0], [0], [1], [0, 0, 1, 1], [], []>} : vector<8x256xbf16>, vector<256x128xbf16>, vector<8x128xf32> -> vector<8x128xf32>
    %c2 = arith.constant 2 : index
    %c0_14 = arith.constant 0 : index
    %20 = vector.load %arg5[%c2, %c0_14] : memref<3x256xf32, #tpu.memory_space<vmem>>, vector<1x128xf32>
    %21 = vector.broadcast %20 : vector<1x128xf32> to vector<8x128xf32>
    %22 = arith.addf %19, %21 : vector<8x128xf32>
    %cst_15 = arith.constant dense<0xFF800000> : vector<8xf32>
    %23 = vector.multi_reduction <maximumf>, %22, %cst_15 [1] : vector<8x128xf32> to vector<8xf32>
    %24 = vector.shape_cast %23 : vector<8xf32> to vector<8x1xf32>
    %25 = vector.broadcast %24 : vector<8x1xf32> to vector<8x128xf32>
    %26 = arith.subf %22, %25 : vector<8x128xf32>
    %27 = math.exp %26 : vector<8x128xf32>
    %cst_16 = arith.constant dense<0.000000e+00> : vector<8xf32>
    %28 = vector.multi_reduction <add>, %27, %cst_16 [1] : vector<8x128xf32> to vector<8xf32>
    %29 = vector.shape_cast %28 : vector<8xf32> to vector<8x1xf32>
    %30 = vector.broadcast %29 : vector<8x1xf32> to vector<8x128xf32>
    %31 = arith.divf %27, %30 : vector<8x128xf32>
    %32 = arith.truncf %31 : vector<8x128xf32> to vector<8x128xbf16>
    %c0_17 = arith.constant 0 : index
    %c0_18 = arith.constant 0 : index
    %33 = vector.load %arg6[%c0_17, %c0_18] : memref<8x128xbf16, #tpu.memory_space<vmem>>, vector<8x128xbf16>
    tpu.vector_store %arg6[%c0_17, %c0_18], %32 {strides = array<i32>} : memref<8x128xbf16, #tpu.memory_space<vmem>>, vector<8x128xbf16>,
    return
  }
  func.func @transform_0(%arg0: i32) -> (i32, i32) {
    %c0_i32 = arith.constant 0 : i32
    %c0_i32_0 = arith.constant 0 : i32
    return %arg0, %c0_i32 : i32, i32
  }
  func.func @transform_1(%arg0: i32) -> (i32, i32) {
    %c0_i32 = arith.constant 0 : i32
    %c0_i32_0 = arith.constant 0 : i32
    %c0_i32_1 = arith.constant 0 : i32
    return %c0_i32, %c0_i32_0 : i32, i32
  }
  func.func @transform_2(%arg0: i32) -> (i32, i32) {
    %c0_i32 = arith.constant 0 : i32
    %c0_i32_0 = arith.constant 0 : i32
    %c0_i32_1 = arith.constant 0 : i32
    return %c0_i32, %c0_i32_0 : i32, i32
  }
  func.func @transform_3(%arg0: i32) -> (i32, i32) {
    %c0_i32 = arith.constant 0 : i32
    %c0_i32_0 = arith.constant 0 : i32
    %c0_i32_1 = arith.constant 0 : i32
    return %c0_i32, %c0_i32_0 : i32, i32
  }
  func.func @transform_4(%arg0: i32) -> (i32, i32) {
    %c0_i32 = arith.constant 0 : i32
    %c0_i32_0 = arith.constant 0 : i32
    %c0_i32_1 = arith.constant 0 : i32
    return %c0_i32, %c0_i32_0 : i32, i32
  }
  func.func @transform_5(%arg0: i32) -> (i32, i32) {
    %c0_i32 = arith.constant 0 : i32
    %c0_i32_0 = arith.constant 0 : i32
    return %arg0, %c0_i32 : i32, i32
  }
}

</mosaic_0001>

<bundles_post_ra>
// kernel: actor_forward.1
= control target key start
LH: loop header
LB: loop body
LE: loop exit
PB: predicated region body
PF: predicated region fallthrough
CT: control target
= control target key end

     0   :  { %10 = vsyncpa [#allocation3], 0  ;;  %s919_s0 = inlined_call_operand.hbm [shape: f32[8,8], index: 0, kind: input, shape index: {}]   ;;  %s920_s1 = inlined_call_operand.hbm [shape: bf16[8,256], index: 1, kind: input, shape index: {}]   ;;  %s921_s2 = inlined_call_operand.hbm [shape: bf16[256,256], index: 2, kind: input, shape index: {}]   ;;  %s922_s3 = inlined_call_operand.hbm [shape: bf16[256,128], index: 3, kind: input, shape index: {}]   ;;  %s923_s4 = inlined_call_operand.hbm [shape: f32[3,256], index: 4, kind: input, shape index: {}]   ;;  %s924_s5 = inlined_call_operand.vmem [shape: bf16[8,128], index: 5, kind: output, shape index: {}]  }
   0x1   :  { %11 = vsyncpa [#allocation5], 0 }
   0x2   :  { %12 = vsyncpa [#allocation8], 0  ;;  %s861_s18 = smov [#allocation4]   ;;  %s862_s20 = smov [#allocation7]  }
   0x3   :  { %s29_s19 = sshll.u32 %s861_s18, 4  ;;  %s50_s21 = sshll.u32 %s862_s20, 4  ;;  %s30_s19 = int_to_ptr.vmem [resolvable:$true] %s29_s19  ;;  %s51_s21 = int_to_ptr.vmem [resolvable:$true] %s50_s21 }
   0x4   :  { %s763_s22 = scalar_lea.vmem %s30_s19, 128  ;;  %p768_p1 = scmp.lt.s32.totalorder %s30_s19, %s30_s19 }
   0x5   :  { %p764_p0 = scmp.ne.s32.totalorder %s30_s19, %s763_s22  ;;  %p769_p2 = scmp.lt.s32.totalorder %s763_s22, %s763_s22 }
   0x7   :  { %p770_p3 = por %p769_p2, %p768_p1 }
   0x9   :  { %p771_p4 = pnand %p770_p3, %p764_p0 }
   0xb   :  { %774 = shalt.err (!%p771_p4)
}
   0xc   :  { %32 = dma.hbm_to_vmem [thread:$0]  %s920_s1, 128, %s30_s19, [#allocation5]  }
   0xd   :  { %s783_s25 = scalar_lea.vmem %s51_s21, 2048  ;;  %p788_p6 = scmp.lt.s32.totalorder %s51_s21, %s51_s21 }
   0xe   :  { %p784_p5 = scmp.ne.s32.totalorder %s51_s21, %s783_s25  ;;  %p789_p7 = scmp.lt.s32.totalorder %s783_s25, %s783_s25 }
  0x10   :  { %p790_p8 = por %p789_p7, %p788_p6 }
  0x12   :  { %p791_p9 = pnand %p790_p8, %p784_p5 }
  0x14   :  { %794 = shalt.err (!%p791_p9)
}
  0x15   :  { %s863_s26 = smov 64   ;;  %s864_s27 = smov 4  }
  0x16   :  { %56 = dma.hbm_to_vmem [thread:$0]  %s922_s3, 2048, %s51_s21, [#allocation8], %s863_s26, %s863_s26, %s864_s27  }
  0x17   :  { %s865_s30 = smov [#allocation2]   ;;  %s866_s7 = smov [#allocation6]  }
  0x18   :  { %s19_s6 = sshll.u32 %s865_s30, 4  ;;  %s38_s8 = sshll.u32 %s866_s7, 4  ;;  %s20_s6 = int_to_ptr.vmem [resolvable:$true] %s19_s6  ;;  %s39_s8 = int_to_ptr.vmem [resolvable:$true] %s38_s8 }
  0x19   :  { %s803_s1 = scalar_lea.vmem %s20_s6, 128  ;;  %p808_p11 = scmp.lt.s32.totalorder %s20_s6, %s20_s6 }
  0x1a   :  { %p804_p10 = scmp.ne.s32.totalorder %s20_s6, %s803_s1  ;;  %p809_p12 = scmp.lt.s32.totalorder %s803_s1, %s803_s1 }
  0x1c   :  { %p810_p13 = por %p809_p12, %p808_p11 }
  0x1e   :  { %p811_p0 = pnand %p810_p13, %p804_p10 }
  0x20   :  { %814 = shalt.err (!%p811_p0)
}
  0x21   :  { %22 = dma.hbm_to_vmem [thread:$0]  %s919_s0, 128, %s20_s6, [#allocation3]  }
  0x22   :  { %s823_s11 = scalar_lea.vmem %s39_s8, 4096  ;;  %p828_p2 = scmp.lt.s32.totalorder %s39_s8, %s39_s8 }
  0x23   :  { %p824_p1 = scmp.ne.s32.totalorder %s39_s8, %s823_s11  ;;  %p829_p3 = scmp.lt.s32.totalorder %s823_s11, %s823_s11 }
  0x25   :  { %p830_p4 = por %p829_p3, %p828_p2 }
  0x27   :  { %p831_p5 = pnand %p830_p4, %p824_p1 }
  0x29   :  { %834 = shalt.err (!%p831_p5)
}
  0x2a   :  { %s867_s3 = smov 128   ;;  %s868_s12 = smov 8  }
  0x2b   :  { %44 = dma.hbm_to_vmem [thread:$0]  %s921_s2, 4096, %s39_s8, [#allocation5], %s867_s3, %s867_s3, %s868_s12  }
  0x2c   :  { %s869_s15 = smov [#allocation9]  }
  0x2d   :  { %s63_s16 = sshll.u32 %s869_s15, 4  ;;  %s64_s16 = int_to_ptr.vmem [resolvable:$true] %s63_s16 }
  0x2e   :  { %s843_s17 = scalar_lea.vmem %s64_s16, 128  ;;  %p848_p7 = scmp.lt.s32.totalorder %s64_s16, %s64_s16 }
  0x2f   :  { %p844_p6 = scmp.ne.s32.totalorder %s64_s16, %s843_s17  ;;  %p849_p8 = scmp.lt.s32.totalorder %s843_s17, %s843_s17 }
  0x31   :  { %p850_p9 = por %p849_p8, %p848_p7 }
  0x33   :  { %p851_p10 = pnand %p850_p9, %p844_p6 }
  0x35   :  { %854 = shalt.err (!%p851_p10)
}
  0x36   :  { %66 = dma.hbm_to_vmem [thread:$0]  %s923_s4, 128, %s64_s16, [#allocation8]  }
  0x37   :  { %855 = dma.done.wait [#allocation3], 128  }
  0x38   :  { %856 = vsyncadd [#allocation3], 4294967168 }
  0x39   :  { %857 = dma.done.wait [#allocation5], 4224  }
  0x3a   :  { %858 = vsyncadd [#allocation5], 4294963072 }
  0x3b   :  { %859 = dma.done.wait [#allocation8], 2176  }
  0x3c   :  { %860 = vsyncadd [#allocation8], 4294965120  ;;  %v870_v0 = vmov 0   ;;  %v85_v1 = vld [vmem:[#allocation4] sm:$0xff]  ;;  %vm107_vm0 = vcmask 1043456   ;;  %v83_v2 = vld [vmem:[#allocation2] sm:$0xff]  ;;  %v88_v51 = vlaneseq }
  0x3d   :  { %146 = vmatprep.mubr.bf16.mxu0 %v870_v0  ;;  %v601_v3 = vcombine.high %v85_v1, %v85_v1  ;;  %v600_v4 = vcombine.low %v85_v1, %v85_v1  ;;  %v687_v5 = vld [vmem:[#allocation6 + $0x74] ss:$8 sps:$4 sm:$0xff]   ;;  %v689_v6 = vld [vmem:[#allocation6 + $0x70] ss:$8 sps:$4 sm:$0xff]   ;;  %v690_v7 = vld [vmem:[#allocation6 + $0x64] ss:$8 sps:$4 sm:$0xff]   ;;  %v84_v9 = vpack.c.bf16 %v83_v2, %v83_v2 }
  0x3e   :  { %364 = vmatprep.subr.bf16.mxu1 %v687_v5  ;;  %vm103_vm1 = vcmask 64512   ;;  %v692_v10 = vld [vmem:[#allocation6 + $0x60] ss:$8 sps:$4 sm:$0xff]   ;;  %v693_v11 = vld [vmem:[#allocation6 + $0x54] ss:$8 sps:$4 sm:$0xff]   ;;  %v89_v52 = vshrl.u32 %v88_v51, 7 }
  0x3f   :  { %602 = vmatprep.subr.msk.bf16.mxu0 %vm107_vm0, %v601_v3  ;;  %v109_v8 = vsel %vm107_vm0, %v600_v4, 0  ;;  %365 = vmatpush1.bf16.msra.mxu1 %v689_v6  ;;  %v695_v12 = vld [vmem:[#allocation6 + $0x50] ss:$8 sps:$4 sm:$0xff]   ;;  %v696_v13 = vld [vmem:[#allocation6 + $0x44] ss:$8 sps:$4 sm:$0xff]  }
  0x40   :  { %129 = vmatpush1.bf16.msra.mxu0 %v109_v8  ;;  %366 = vmatprep.subr.bf16.mxu1 %v690_v7  ;;  %v698_v14 = vld [vmem:[#allocation6 + $0x40] ss:$8 sps:$4 sm:$0xff]   ;;  %v699_v15 = vld [vmem:[#allocation6 + $0x34] ss:$8 sps:$4 sm:$0xff]   ;;  %v701_v16 = vld [vmem:[#allocation6 + $0x30] ss:$8 sps:$4 sm:$0xff]  }
  0x41   :  { %v702_v17 = vld [vmem:[#allocation6 + $0x24] ss:$8 sps:$4 sm:$0xff]   ;;  %v704_v18 = vld [vmem:[#allocation6 + $0x20] ss:$8 sps:$4 sm:$0xff]   ;;  %v705_v19 = vld [vmem:[#allocation6 + $0x14] ss:$8 sps:$4 sm:$0xff]  }
  0x42   :  { %v707_v20 = vld [vmem:[#allocation6 + $0x10] ss:$8 sps:$4 sm:$0xff]   ;;  %v708_v21 = vld [vmem:[#allocation6 + $0x4] ss:$8 sps:$4 sm:$0xff]   ;;  %v710_v22 = vld [vmem:[#allocation6] ss:$8 sps:$4 sm:$0xff]  }
  0x43   :  { %603 = vmatmul.mubr.msk.bf16.vlgmr.msra.gmra.mxu0 %vm103_vm1, %v84_v9  ;;  %367 = vmatpush1.bf16.msra.mxu1 %v692_v10  ;;  %v711_v23 = vld [vmem:[#allocation6 + $0xf4] ss:$8 sps:$4 sm:$0xff]   ;;  %v713_v24 = vld [vmem:[#allocation6 + $0xf0] ss:$8 sps:$4 sm:$0xff]   ;;  %v714_v25 = vld [vmem:[#allocation6 + $0xe4] ss:$8 sps:$4 sm:$0xff]  }
  0x44   :  { %368 = vmatprep.subr.bf16.mxu1 %v693_v11  ;;  %v716_v26 = vld [vmem:[#allocation6 + $0xe0] ss:$8 sps:$4 sm:$0xff]   ;;  %v717_v27 = vld [vmem:[#allocation6 + $0xd4] ss:$8 sps:$4 sm:$0xff]   ;;  %v719_v28 = vld [vmem:[#allocation6 + $0xd0] ss:$8 sps:$4 sm:$0xff]  }
  0x45   :  { %v720_v29 = vld [vmem:[#allocation6 + $0xc4] ss:$8 sps:$4 sm:$0xff]   ;;  %v722_v30 = vld [vmem:[#allocation6 + $0xc0] ss:$8 sps:$4 sm:$0xff]   ;;  %v723_v31 = vld [vmem:[#allocation6 + $0xb4] ss:$8 sps:$4 sm:$0xff]  }
  0x46   :  { %v725_v32 = vld [vmem:[#allocation6 + $0xb0] ss:$8 sps:$4 sm:$0xff]   ;;  %v726_v33 = vld [vmem:[#allocation6 + $0xa4] ss:$8 sps:$4 sm:$0xff]   ;;  %v728_v34 = vld [vmem:[#allocation6 + $0xa0] ss:$8 sps:$4 sm:$0xff]  }
  0x47   :  { %369 = vmatpush1.bf16.msra.mxu1 %v695_v12  ;;  %v729_v35 = vld [vmem:[#allocation6 + $0x94] ss:$8 sps:$4 sm:$0xff]   ;;  %v731_v36 = vld [vmem:[#allocation6 + $0x90] ss:$8 sps:$4 sm:$0xff]   ;;  %v732_v37 = vld [vmem:[#allocation6 + $0x84] ss:$8 sps:$4 sm:$0xff]  }
  0x48   :  { %370 = vmatprep.subr.bf16.mxu1 %v696_v13  ;;  %v734_v38 = vld [vmem:[#allocation6 + $0x80] ss:$8 sps:$4 sm:$0xff]   ;;  %v735_v39 = vld [vmem:[#allocation7 + $0x78] sm:$0xff]   ;;  %v737_v41 = vld [vmem:[#allocation7 + $0x70] sm:$0xff]   ;;  %v90_v53 = vsub.s32 0, %v89_v52  ;;  %v94_v55 = vsub.s32 1, %v89_v52 }
  0x49   :  { %v736_v40 = vld [vmem:[#allocation7 + $0x38] sm:$0xff]   ;;  %653 = vmatprep.subr.bf16.mxu0 %v735_v39  ;;  %v738_v42 = vld [vmem:[#allocation7 + $0x30] sm:$0xff]   ;;  %v739_v43 = vld [vmem:[#allocation7 + $0x68] sm:$0xff]  }
  0x4a   :  { %654 = vmatpush3.bf16.msra.mxu0 %v736_v40  ;;  %v740_v44 = vld [vmem:[#allocation7 + $0x28] sm:$0xff]   ;;  %v741_v45 = vld [vmem:[#allocation7 + $0x60] sm:$0xff]   ;;  %v743_v47 = vld [vmem:[#allocation7 + $0x58] sm:$0xff]  }
  0x4b   :  { %371 = vmatpush1.bf16.msra.mxu1 %v698_v14  ;;  %655 = vmatprep.subr.bf16.mxu0 %v737_v41  ;;  %v742_v46 = vld [vmem:[#allocation7 + $0x20] sm:$0xff]   ;;  %v744_v48 = vld [vmem:[#allocation7 + $0x18] sm:$0xff]   ;;  %v745_v49 = vld [vmem:[#allocation7 + $0x50] sm:$0xff]  }
  0x4c   :  { %372 = vmatprep.subr.bf16.mxu1 %v699_v15  ;;  %v746_v50 = vld [vmem:[#allocation7 + $0x10] sm:$0xff]   ;;  %v86_v54 = vld [vmem:[#allocation9] ss:$4 sm:$0x3]  ;;  %v747_v4 = vld [vmem:[#allocation7 + $0x48] sm:$0xff]  }
  0x4d   :  { %v91_v56 = vrot.slane %v86_v54, %v90_v53  ;;  %v95_v57 = vrot.slane %v86_v54, %v94_v55  ;;  %v748_v5 = vld [vmem:[#allocation7 + $0x8] sm:$0xff]   ;;  %v749_v6 = vld [vmem:[#allocation7 + $0x40] sm:$0xff]  }
  0x4e   :  { %656 = vmatpush3.bf16.msra.mxu0 %v738_v42  ;;  %v750_v7 = vld [vmem:[#allocation7] sm:$0xff]  }
  0x4f   :  { %373 = vmatpush1.bf16.msra.mxu1 %v701_v16  ;;  %657 = vmatprep.subr.bf16.mxu0 %v739_v43  ;;  %v192_v8 = vld [vmem:[#allocation9 + $0x1] ss:$4 sm:$0x3] }
  0x50   :  { %374 = vmatprep.subr.bf16.mxu1 %v702_v17  ;;  %v197_v9 = vrot.slane %v192_v8, %v90_v53  ;;  %v201_v10 = vrot.slane %v192_v8, %v94_v55 }
  0x52   :  { %658 = vmatpush3.bf16.msra.mxu0 %v740_v44 }
  0x53   :  { %375 = vmatpush1.bf16.msra.mxu1 %v704_v18  ;;  %659 = vmatprep.subr.bf16.mxu0 %v741_v45 }
  0x54   :  { %376 = vmatprep.subr.bf16.mxu1 %v705_v19 }
  0x56   :  { %660 = vmatpush3.bf16.msra.mxu0 %v742_v46 }
  0x57   :  { %377 = vmatpush1.bf16.msra.mxu1 %v707_v20  ;;  %661 = vmatprep.subr.bf16.mxu0 %v743_v47 }
  0x58   :  { %378 = vmatprep.subr.bf16.mxu1 %v708_v21 }
  0x5a   :  { %662 = vmatpush3.bf16.msra.mxu0 %v744_v48 }
  0x5b   :  { %379 = vmatpush1.bf16.msra.mxu1 %v710_v22  ;;  %663 = vmatprep.subr.bf16.mxu0 %v745_v49 }
  0x5c   :  { %380 = vmatprep.subr.bf16.mxu1 %v711_v23  ;;  %v636_v23 = vld [vmem:[#allocation9 + $0x2] ss:$0 sm:$0xff] }
  0x5e   :  { %664 = vmatpush3.bf16.msra.mxu0 %v746_v50 }
  0x5f   :  { %381 = vmatpush2.bf16.msra.mxu1 %v713_v24  ;;  %665 = vmatprep.subr.bf16.mxu0 %v747_v4 }
  0x60   :  { %382 = vmatprep.subr.bf16.mxu1 %v714_v25 }
  0x62   :  { %666 = vmatpush3.bf16.msra.mxu0 %v748_v5 }
  0x63   :  { %383 = vmatpush2.bf16.msra.mxu1 %v716_v26  ;;  %667 = vmatprep.subr.bf16.mxu0 %v749_v6 }
  0x64   :  { %384 = vmatprep.subr.bf16.mxu1 %v717_v27 }
  0x66   :  { %668 = vmatpush3.bf16.msra.mxu0 %v750_v7 }
  0x67   :  { %385 = vmatpush2.bf16.msra.mxu1 %v719_v28 }
  0x68   :  { %386 = vmatprep.subr.bf16.mxu1 %v720_v29 }
  0x6b   :  { %387 = vmatpush2.bf16.msra.mxu1 %v722_v30 }
  0x6c   :  { %388 = vmatprep.subr.bf16.mxu1 %v723_v31 }
  0x6f   :  { %389 = vmatpush2.bf16.msra.mxu1 %v725_v32 }
  0x70   :  { %390 = vmatprep.subr.bf16.mxu1 %v726_v33 }
  0x73   :  { %391 = vmatpush2.bf16.msra.mxu1 %v728_v34 }
  0x74   :  { %392 = vmatprep.subr.bf16.mxu1 %v729_v35 }
  0x77   :  { %393 = vmatpush2.bf16.msra.mxu1 %v731_v36 }
  0x78   :  { %394 = vmatprep.subr.bf16.mxu1 %v732_v37 }
  0x7b   :  { %395 = vmatpush2.bf16.msra.mxu1 %v734_v38 }
 0x103   :  { %v148_v58 = vpop.f32.mrf.mxu0 }
 0x104   :  { %v149_v59 = vadd.f32 %v148_v58, %v91_v56 }
 0x105   :  { %v150_v60 = vpop.f32.mrf.mxu0 }
 0x106   :  { %v151_v61 = vadd.f32 %v150_v60, %v95_v57  ;;  %v155_v62 = vmax.f32 %v149_v59, 0.0 }
 0x107   :  { %v152_v63 = vpop.f32.mrf.mxu0 }
 0x108   :  { %v156_v0 = vmax.f32 %v151_v61, 0.0  ;;  %v157_v3 = vpack.c.bf16 %v155_v62, %v155_v62 }
 0x109   :  { %v153_v1 = vpop.f32.mrf.mxu0 }
 0x10a   :  { %v158_v2 = vpack.c.bf16 %v156_v0, %v156_v0 }
 0x10c   :  { %396 = vmatprep.mubr.bf16.mxu1 %v158_v2 }
 0x10d   :  { %397 = vmatmul.mubr.bf16.vlgmr.msra.gmra.mxu1 %v157_v3 }
 0x1cd   :  { %v398_v11 = vpop.f32.mrf.mxu1 }
 0x1ce   :  { %v399_v12 = vadd.f32 %v398_v11, %v197_v9 }
 0x1cf   :  { %v400_v13 = vpop.f32.mrf.mxu1 }
 0x1d0   :  { %v401_v14 = vadd.f32 %v400_v13, %v201_v10  ;;  %v405_v15 = vmax.f32 %v399_v12, 0.0 }
 0x1d1   :  { %v402_v16 = vpop.f32.mrf.mxu1 }
 0x1d2   :  { %v406_v17 = vmax.f32 %v401_v14, 0.0  ;;  %v407_v20 = vpack.c.bf16 %v405_v15, %v405_v15 }
 0x1d3   :  { %v403_v18 = vpop.f32.mrf.mxu1 }
 0x1d4   :  { %v408_v19 = vpack.c.bf16 %v406_v17, %v406_v17 }
 0x1d6   :  { %574 = vmatprep.mubr.bf16.mxu0 %v408_v19 }
 0x1d7   :  { %575 = vmatmul.mubr.bf16.vlgmr.msra.gmra.mxu0 %v407_v20 }
 0x297   :  { %v669_v21 = vpop.f32.mrf.mxu0 }
 0x299   :  { %v670_v22 = vpop.f32.mrf.mxu0 }
 0x29a   :  { %v671_v24 = vadd.f32 %v670_v22, %v669_v21 }
 0x29b   :  { %v672_v25 = vpop.f32.mrf.mxu0 }
 0x29c   :  { %v577_v26 = vadd.f32 %v671_v24, %v636_v23 }
 0x29d   :  { %v673_v27 = vpop.f32.mrf.mxu0 }
 0x29e   :  { %582 = vmax.xlane.f32.xlu0 %v577_v26 }
 0x327   :  { %v583_v28 = vpop.xlane.xlu0 %582 }
 0x328   :  { %v584_v29 = vsub.f32 %v577_v26, %v583_v28 }
 0x32a   :  { %v585_v30 = vmul.f32 1.442695, %v584_v29 }
 0x32c   :  { %751 = vpow2.f32 %v585_v30 }
 0x339   :  { %v752_v31 = vpop.eup %751 }
 0x33a   :  { %587 = vadd.xlane.f32.xlu0 %v752_v31 }
 0x3c3   :  { %v588_v32 = vpop.xlane.xlu0 %587 }
 0x3c4   :  { %753 = vrcp.f32 %v588_v32 }
 0x3d1   :  { %v754_v33 = vpop.eup %753 }
 0x3d2   :  { %v590_v34 = vmul.f32 %v754_v33, %v752_v31 }
 0x3d4   :  { %v591_v35 = vpack.c.bf16 %v590_v34, %v590_v34 }
 0x3d6   :  { %592 = vst [vmem:[%s924_s5] sm:$0xf] %v591_v35 }
 0x3d7   :  { %597 = vsyncpa [#allocation3], 1 }
 0x3d8   :  { %598 = vsyncpa [#allocation5], 1 }
 0x3d9   :  { %599 = vsyncpa [#allocation8], 1 }

</bundles_post_ra>
